<compile_context>
chip_gen: v6e
topology: v6e:2x2x1
jax: 0.10.0
libtpu: 0.0.40
codegen_flags: <defaults>
</compile_context>

<pallas_src>
import jax
import jax.numpy as jnp
from jax.experimental import pallas as pl
from jax.experimental.pallas import tpu as pltpu


def _round_up(x: int, m: int) -> int:
    return ((x + m - 1) // m) * m


def _cdiv(a: int, b: int) -> int:
    return -(-a // b)


def _vmem_capacity_bytes() -> int:
    try:
        info = pltpu.get_tpu_info()
        cap = int(getattr(info, "vmem_capacity_bytes", 0) or 0)
        if cap > 0:
            return cap
    except Exception:
        pass
    return 64 << 20  # conservative default (v7x per-TensorCore VMEM)


def _mlp_link_kernel(ei_ref, ej_ref, w2t_ref, w1_ref, b1_ref, out_ref, acc_ref):
    k = pl.program_id(1)

    @pl.when(k == 0)
    def _():
        acc_ref[...] = jnp.zeros_like(acc_ref)

    # Elementwise product in the embeddings' native dtype; cast once for the MXU.
    x = ei_ref[...] * ej_ref[...]                                     # [TB, D]
    h = jnp.dot(x.astype(w2t_ref.dtype), w2t_ref[...],
                preferred_element_type=jnp.float32)                   # [TB, TN]
    h = jnp.maximum(h, 0.0)                                           # ReLU
    # Output unit (out_features == 1): VPU multiply + row reduction (XLU slack).
    acc_ref[...] += jnp.sum(h * w1_ref[...], axis=-1, keepdims=True)  # [TB, 1]

    @pl.when(k == pl.num_programs(1) - 1)
    def _():
        out_ref[...] = (acc_ref[...] + b1_ref[0]).astype(out_ref.dtype)


def prepare_params(w2, w1, b1, *, matmul_dtype=jnp.bfloat16):
    """One-time parameter preparation (at load time, never per call).

    w2: [D, D] PyTorch Linear weight ([out, in]) -> transposed; hidden(out) dim
        zero-padded to a multiple of 128 lanes; stored in `matmul_dtype`.
    w1: [1, D] -> zero-padded to [1, Dp], kept f32 (exact final reduction).
    b1: [1]    -> f32 scalar (SMEM).
    """
    D = w2.shape[0]
    Dp = _round_up(max(D, 128), 128)
    w2t = jnp.zeros((D, Dp), matmul_dtype).at[:, :D].set(jnp.asarray(w2, matmul_dtype).T)
    w1p = jnp.zeros((1, Dp), jnp.float32).at[:, :D].set(jnp.asarray(w1, jnp.float32))
    b1p = jnp.asarray(b1, jnp.float32).reshape((1,))
    return w2t, w1p, b1p


def mlp_link_predictor(emb_i, emb_j, w2t, w1p, b1p, *, block_b=512, block_hidden=None):
    """Forward pass. emb_i/emb_j: [B, D] (streamed in their own dtype; cast them at
    the producer if you want bf16 streaming).  Returns [B] f32 logits."""
    B, D = emb_i.shape
    assert emb_j.shape == (B, D)
    assert w2t.shape[0] == D
    Dp = w2t.shape[1]

    emb_isize = jnp.dtype(emb_i.dtype).itemsize
    w_isize = jnp.dtype(w2t.dtype).itemsize

    # Sublane packing of the batch tile: f32 packs (8,128) vregs, bf16 (16,128).
    align = max(8, 32 // emb_isize)

    cap = _vmem_capacity_bytes()
    budget = int(cap * 0.8)

    # --- batch tile ---
    if B < align:
        tb = B  # full-extent batch block
    else:
        tb = max(align, (min(block_b, B) // align) * align)

    # --- hidden tile: multiple of 128 that divides Dp (Dp is a 128-multiple) ---
    def _largest_divisor_tile(limit):
        best, c = 128, 128
        while c <= min(limit, Dp):
            if Dp % c == 0:
                best = c
            c += 128
        return best

    tn = Dp if block_hidden is None else _largest_divisor_tile(block_hidden)

    def vmem_need(tb_, tn_):
        nk_ = Dp // tn_
        wbuf = 1 if nk_ == 1 else 2
        return (2 * 2 * tb_ * D * emb_isize            # double-buffered emb_i / emb_j
                + wbuf * D * tn_ * w_isize             # W2^T (resident or pipelined)
                + wbuf * tn_ * 4                       # W1 tile
                + 3 * tb_ * 4                          # out block (x2) + accumulator
                + tb_ * D * (emb_isize + w_isize)      # x product + its MXU-dtype copy
                + 2 * tb_ * tn_ * 4)                   # h / relu f32 temporaries

    # Fit to VMEM: shrink the hidden tile first (keeps the batch tile large),
    # then the batch tile.
    while vmem_need(tb, tn) > budget:
        if tn > 128:
            tn = _largest_divisor_tile(tn - 128)
        elif B >= align and tb > align:
            tb = max(align, (tb // 2 // align) * align)
        else:
            break

    # Megacore (v7x has 2 TensorCores): prefer >= 2 batch grid steps when B allows.
    if _cdiv(B, tb) < 2 and tb >= 2 * align:
        tb = max(align, (_cdiv(tb, 2) // align) * align)

    nb = _cdiv(B, tb)
    nk = Dp // tn
    grid = (nb, nk)

    # Single-buffer the resident weights when the hidden dim is untiled: constant
    # index map -> double buffering buys nothing, so place the whole array in VMEM.
    if nk == 1:
        w2t_spec = pl.BlockSpec(memory_space=pltpu.MemorySpace.VMEM)
        w1_spec = pl.BlockSpec(memory_space=pltpu.MemorySpace.VMEM)
    else:
        w2t_spec = pl.BlockSpec((D, tn), lambda i, k: (0, k))
        w1_spec = pl.BlockSpec((1, tn), lambda i, k: (0, k))

    vmem_limit = int(min(max(int(vmem_need(tb, tn) * 1.25), 16 << 20), cap - (2 << 20)))

    cost = pl.CostEstimate(
        flops=2 * B * D * Dp + 4 * B * D,
        transcendentals=0,
        bytes_accessed=2 * B * D * emb_isize + D * Dp * w_isize + Dp * 4 + 4 * B,
    )

    out = pl.pallas_call(
        _mlp_link_kernel,
        out_shape=jax.ShapeDtypeStruct((B, 1), jnp.float32),
        grid=grid,
        in_specs=[
            pl.BlockSpec((tb, D), lambda i, k: (i, 0)),          # emb_i tile (pipelined)
            pl.BlockSpec((tb, D), lambda i, k: (i, 0)),          # emb_j tile (pipelined)
            w2t_spec,                                            # W2^T
            w1_spec,                                             # W1 row
            pl.BlockSpec(memory_space=pltpu.MemorySpace.SMEM),   # bias scalar
        ],
        out_specs=pl.BlockSpec((tb, 1), lambda i, k: (i, 0)),
        scratch_shapes=[pltpu.VMEM((tb, 1), jnp.float32)],
        compiler_params=pltpu.CompilerParams(
            dimension_semantics=("parallel", "arbitrary"),
            vmem_limit_bytes=vmem_limit,
        ),
        cost_estimate=cost,
    )(emb_i, emb_j, w2t, w1p, b1p)

    return out[:, 0]


def _reference(emb_i, emb_j, w2, w1, b1, matmul_dtype=jnp.bfloat16):
    """Pure-JAX reference emulating the kernel's matmul dtype (f32 accumulation)."""
    x = emb_i.astype(jnp.float32) * emb_j.astype(jnp.float32)
    xm = x.astype(matmul_dtype).astype(jnp.float32)
    wm = jnp.asarray(w2, matmul_dtype).astype(jnp.float32)
    h = jnp.maximum(jnp.dot(xm, wm.T, precision=jax.lax.Precision.HIGHEST), 0.0)
    out = jnp.dot(h, jnp.asarray(w1, jnp.float32).T,
                  precision=jax.lax.Precision.HIGHEST)[:, 0]
    return out + jnp.asarray(b1, jnp.float32)[0]


if __name__ == "__main__":
    key = jax.random.PRNGKey(0)
    k1, k2, k3, k4, k5, k6, k7, k8 = jax.random.split(key, 8)

    # --- Case 1: module-default init (eye W2, ones W1, zero bias), tiny shape.
    B, D = 8, 32
    emb_i = jax.random.normal(k1, (B, D), jnp.float32)
    emb_j = jax.random.normal(k2, (B, D), jnp.float32)
    w2 = jnp.eye(D, dtype=jnp.float32)
    w1 = jnp.ones((1, D), jnp.float32)
    b1 = jnp.zeros((1,), jnp.float32)
    w2t, w1p, b1p = prepare_params(w2, w1, b1)
    out = jax.block_until_ready(mlp_link_predictor(emb_i, emb_j, w2t, w1p, b1p))
    ref = _reference(emb_i, emb_j, w2, w1, b1)
    assert out.shape == (B,)
    assert jnp.allclose(out, ref, atol=3e-2, rtol=3e-2), "case 1 mismatch"

    # --- Case 2: ragged batch tail (B % TB != 0) and D not a multiple of 128,
    #             handled without any wrapper-side padding.
    B2, D2 = 300, 96
    emb_i2 = jax.random.normal(k3, (B2, D2), jnp.float32)
    emb_j2 = jax.random.normal(k4, (B2, D2), jnp.float32)
    w2_2 = jax.random.normal(k5, (D2, D2), jnp.float32) / jnp.sqrt(D2 * 1.0)
    w1_2 = jax.random.normal(k6, (1, D2), jnp.float32) / jnp.sqrt(D2 * 1.0)
    b1_2 = jnp.full((1,), 0.3, jnp.float32)
    w2t2, w1p2, b1p2 = prepare_params(w2_2, w1_2, b1_2)
    out2 = jax.block_until_ready(
        mlp_link_predictor(emb_i2, emb_j2, w2t2, w1p2, b1p2, block_b=128))
    ref2 = _reference(emb_i2, emb_j2, w2_2, w1_2, b1_2)
    assert out2.shape == (B2,)
    assert jnp.allclose(out2, ref2, atol=3e-2, rtol=3e-2), "case 2 mismatch"

    # --- Case 3: bf16 embeddings (cast at the producer) + hidden-dim tiling
    #             (block_hidden=128 forces the 2-step accumulator path).
    B3, D3 = 256, 256
    emb_i3 = jax.random.normal(k7, (B3, D3), jnp.float32).astype(jnp.bfloat16)
    emb_j3 = jax.random.normal(k8, (B3, D3), jnp.float32).astype(jnp.bfloat16)
    w2_3 = jax.random.normal(k5, (D3, D3), jnp.float32) / jnp.sqrt(D3 * 1.0)
    w1_3 = jax.random.normal(k6, (1, D3), jnp.float32) / jnp.sqrt(D3 * 1.0)
    b1_3 = jnp.full((1,), -0.1, jnp.float32)
    w2t3, w1p3, b1p3 = prepare_params(w2_3, w1_3, b1_3)
    out3 = jax.block_until_ready(
        mlp_link_predictor(emb_i3, emb_j3, w2t3, w1p3, b1p3,
                           block_b=128, block_hidden=128))
    ref3 = _reference(emb_i3, emb_j3, w2_3, w1_3, b1_3)
    assert out3.shape == (B3,)
    assert jnp.allclose(out3, ref3, atol=5e-2, rtol=5e-2), "case 3 mismatch"

    print("KERNEL_OK")
</pallas_src>

<mosaic_0001>
module attributes {stable_mosaic.version = 11 : i64} {
  func.func @_mlp_link_kernel(%arg0: i32, %arg1: i32, %arg2: memref<8x32xf32, #tpu.memory_space<vmem>>, %arg3: memref<8x32xf32, #tpu.memory_space<vmem>>, %arg4: memref<32x128xbf16, #tpu.memory_space<vmem>>, %arg5: memref<1x128xf32, #tpu.memory_space<vmem>>, %arg6: memref<1xf32, #tpu.memory_space<smem>>, %arg7: memref<8x1xf32, #tpu.memory_space<vmem>>, %arg8: memref<8x1xf32, #tpu.memory_space<vmem>>) attributes {dimension_semantics = [#tpu.dimension_semantics<parallel>, #tpu.dimension_semantics<arbitrary>], iteration_bounds = array<i64: 1, 1>, scalar_prefetch = 0 : i64, scratch_operands = 1 : i64, tpu.core_type = #tpu.core_type<tc>, window_params = [{transform_indices = @transform_0, window_bounds = array<i64: 8, 32>}, {transform_indices = @transform_1, window_bounds = array<i64: 8, 32>}, {pipeline_mode = #tpu.pipeline_mode<synchronous>, transform_indices = @transform_2, window_bounds = array<i64: 32, 128>}, {pipeline_mode = #tpu.pipeline_mode<synchronous>, transform_indices = @transform_3, window_bounds = array<i64: 1, 128>}, {transform_indices = @transform_4, window_bounds = array<i64: 1>}, {transform_indices = @transform_5, window_bounds = array<i64: 8, 1>}]} {
    %c0_i32 = arith.constant 0 : i32
    %0 = arith.cmpi eq, %arg1, %c0_i32 : i32
    %1 = arith.extui %0 : i1 to i32
    %c0_i32_0 = arith.constant 0 : i32
    %2 = arith.cmpi ne, %1, %c0_i32_0 : i32
    scf.if %2 {
      %cst_16 = arith.constant 0.000000e+00 : f32
      %22 = vector.broadcast %cst_16 : f32 to vector<8x1xf32>
      %c0_17 = arith.constant 0 : index
      %c0_18 = arith.constant 0 : index
      %23 = vector.load %arg8[%c0_17, %c0_18] : memref<8x1xf32, #tpu.memory_space<vmem>>, vector<8x1xf32>
      tpu.vector_store %arg8[%c0_17, %c0_18], %22 {strides = array<i32>} : memref<8x1xf32, #tpu.memory_space<vmem>>, vector<8x1xf32>,
    } else {
    }
    %c0 = arith.constant 0 : index
    %c0_1 = arith.constant 0 : index
    %3 = vector.load %arg2[%c0, %c0_1] : memref<8x32xf32, #tpu.memory_space<vmem>>, vector<8x32xf32>
    %c0_2 = arith.constant 0 : index
    %c0_3 = arith.constant 0 : index
    %4 = vector.load %arg3[%c0_2, %c0_3] : memref<8x32xf32, #tpu.memory_space<vmem>>, vector<8x32xf32>
    %5 = arith.mulf %3, %4 : vector<8x32xf32>
    %6 = arith.truncf %5 : vector<8x32xf32> to vector<8x32xbf16>
    %c0_4 = arith.constant 0 : index
    %c0_5 = arith.constant 0 : index
    %7 = vector.load %arg4[%c0_4, %c0_5] : memref<32x128xbf16, #tpu.memory_space<vmem>>, vector<32x128xbf16>
    %cst = arith.constant dense<0.000000e+00> : vector<8x128xf32>
    %8 = tpu.matmul %6, %7, %cst {dimension_numbers = #tpu.dot_dimension_numbers<[1], [0], [0], [1], [0, 0, 1, 1], [], []>} : vector<8x32xbf16>, vector<32x128xbf16>, vector<8x128xf32> -> vector<8x128xf32>
    %cst_6 = arith.constant 0.000000e+00 : f32
    %9 = vector.broadcast %cst_6 : f32 to vector<8x128xf32>
    %10 = arith.maximumf %8, %9 : vector<8x128xf32>
    %c0_7 = arith.constant 0 : index
    %c0_8 = arith.constant 0 : index
    %11 = vector.load %arg8[%c0_7, %c0_8] : memref<8x1xf32, #tpu.memory_space<vmem>>, vector<8x1xf32>
    %c0_9 = arith.constant 0 : index
    %c0_10 = arith.constant 0 : index
    %12 = vector.load %arg5[%c0_9, %c0_10] : memref<1x128xf32, #tpu.memory_space<vmem>>, vector<1x128xf32>
    %13 = vector.broadcast %12 : vector<1x128xf32> to vector<8x128xf32>
    %14 = arith.mulf %10, %13 : vector<8x128xf32>
    %cst_11 = arith.constant dense<0.000000e+00> : vector<8xf32>
    %15 = vector.multi_reduction <add>, %14, %cst_11 [1] : vector<8x128xf32> to vector<8xf32>
    %16 = vector.shape_cast %15 : vector<8xf32> to vector<8x1xf32>
    %17 = arith.addf %11, %16 : vector<8x1xf32>
    %c0_12 = arith.constant 0 : index
    %c0_13 = arith.constant 0 : index
    %18 = vector.load %arg8[%c0_12, %c0_13] : memref<8x1xf32, #tpu.memory_space<vmem>>, vector<8x1xf32>
    tpu.vector_store %arg8[%c0_12, %c0_13], %17 {strides = array<i32>} : memref<8x1xf32, #tpu.memory_space<vmem>>, vector<8x1xf32>,
    %c0_i32_14 = arith.constant 0 : i32
    %19 = arith.cmpi eq, %arg1, %c0_i32_14 : i32
    %20 = arith.extui %19 : i1 to i32
    %c0_i32_15 = arith.constant 0 : i32
    %21 = arith.cmpi ne, %20, %c0_i32_15 : i32
    scf.if %21 {
      %c0_16 = arith.constant 0 : index
      %c0_17 = arith.constant 0 : index
      %22 = vector.load %arg8[%c0_16, %c0_17] : memref<8x1xf32, #tpu.memory_space<vmem>>, vector<8x1xf32>
      %c0_18 = arith.constant 0 : index
      %23 = memref.load %arg6[%c0_18] : memref<1xf32, #tpu.memory_space<smem>>
      %24 = vector.broadcast %23 : f32 to vector<8x1xf32>
      %25 = arith.addf %22, %24 : vector<8x1xf32>
      %c0_19 = arith.constant 0 : index
      %c0_20 = arith.constant 0 : index
      %26 = vector.load %arg7[%c0_19, %c0_20] : memref<8x1xf32, #tpu.memory_space<vmem>>, vector<8x1xf32>
      tpu.vector_store %arg7[%c0_19, %c0_20], %25 {strides = array<i32>} : memref<8x1xf32, #tpu.memory_space<vmem>>, vector<8x1xf32>,
    } else {
    }
    return
  }
  func.func @transform_0(%arg0: i32, %arg1: i32) -> (i32, i32) {
    %c0_i32 = arith.constant 0 : i32
    %c0_i32_0 = arith.constant 0 : i32
    return %arg0, %c0_i32 : i32, i32
  }
  func.func @transform_1(%arg0: i32, %arg1: i32) -> (i32, i32) {
    %c0_i32 = arith.constant 0 : i32
    %c0_i32_0 = arith.constant 0 : i32
    return %arg0, %c0_i32 : i32, i32
  }
  func.func @transform_2(%arg0: i32, %arg1: i32) -> (i32, i32) {
    %c0_i32 = arith.constant 0 : i32
    %c0_i32_0 = arith.constant 0 : i32
    %c0_i32_1 = arith.constant 0 : i32
    return %c0_i32, %c0_i32_0 : i32, i32
  }
  func.func @transform_3(%arg0: i32, %arg1: i32) -> (i32, i32) {
    %c0_i32 = arith.constant 0 : i32
    %c0_i32_0 = arith.constant 0 : i32
    %c0_i32_1 = arith.constant 0 : i32
    return %c0_i32, %c0_i32_0 : i32, i32
  }
  func.func @transform_4(%arg0: i32, %arg1: i32) -> i32 {
    %c0_i32 = arith.constant 0 : i32
    %c0_i32_0 = arith.constant 0 : i32
    return %c0_i32 : i32
  }
  func.func @transform_5(%arg0: i32, %arg1: i32) -> (i32, i32) {
    %c0_i32 = arith.constant 0 : i32
    %c0_i32_0 = arith.constant 0 : i32
    return %arg0, %c0_i32 : i32, i32
  }
}

</mosaic_0001>

<bundles_post_ra>
// kernel: tpu_custom_call.1
= control target key start
LH: loop header
LB: loop body
LE: loop exit
PB: predicated region body
PF: predicated region fallthrough
CT: control target
= control target key end

     0   :  { %11 = vsyncpa [#allocation5], 0  ;;  %s304_s0 = inlined_call_operand.hbm [shape: f32[8,32], index: 0, kind: input, shape index: {}]   ;;  %s305_s1 = inlined_call_operand.hbm [shape: f32[8,32], index: 1, kind: input, shape index: {}]   ;;  %s306_s2 = inlined_call_operand.hbm [shape: bf16[32,128], index: 2, kind: input, shape index: {}]   ;;  %s307_s3 = inlined_call_operand.vmem [shape: f32[1,128], index: 3, kind: input, shape index: {}]   ;;  %s308_s4 = inlined_call_operand.<no memory space> [shape: f32[1], index: 4, kind: input, shape index: {}]   ;;  %s309_s5 = inlined_call_operand.vmem [shape: f32[8,1], index: 5, kind: output, shape index: {}]  }
   0x1   :  { %12 = vsyncpa [#allocation7], 0  ;;  %s246_s18 = smov [#allocation6]   ;;  %s247_s20 = smov [#allocation4]  }
   0x2   :  { %s29_s19 = sshll.u32 %s246_s18, 4  ;;  %s19_s21 = sshll.u32 %s247_s20, 4  ;;  %s30_s19 = int_to_ptr.vmem [resolvable:$true] %s29_s19  ;;  %s20_s21 = int_to_ptr.vmem [resolvable:$true] %s19_s21 }
   0x3   :  { %s190_s22 = scalar_lea.vmem %s30_s19, 128  ;;  %p195_p1 = scmp.lt.s32.totalorder %s30_s19, %s30_s19 }
   0x4   :  { %p191_p0 = scmp.ne.s32.totalorder %s30_s19, %s190_s22  ;;  %p196_p2 = scmp.lt.s32.totalorder %s190_s22, %s190_s22 }
   0x6   :  { %p197_p3 = por %p196_p2, %p195_p1 }
   0x8   :  { %p198_p4 = pnand %p197_p3, %p191_p0 }
   0xa   :  { %201 = shalt.err (!%p198_p4)
}
   0xb   :  { %32 = dma.hbm_to_vmem [thread:$0]  %s305_s1, 128, %s30_s19, [#allocation7]  }
   0xc   :  { %s210_s25 = scalar_lea.vmem %s20_s21, 128  ;;  %p215_p6 = scmp.lt.s32.totalorder %s20_s21, %s20_s21 }
   0xd   :  { %p211_p5 = scmp.ne.s32.totalorder %s20_s21, %s210_s25  ;;  %p216_p7 = scmp.lt.s32.totalorder %s210_s25, %s210_s25 }
   0xf   :  { %p217_p8 = por %p216_p7, %p215_p6 }
  0x11   :  { %p218_p9 = pnand %p217_p8, %p211_p5 }
  0x13   :  { %221 = shalt.err (!%p218_p9)
}
  0x14   :  { %22 = dma.hbm_to_vmem [thread:$0]  %s304_s0, 128, %s20_s21, [#allocation5]  }
  0x15   :  { %s248_s28 = smov [#allocation8]  }
  0x16   :  { %s38_s29 = sshll.u32 %s248_s28, 4  ;;  %s39_s29 = int_to_ptr.vmem [resolvable:$true] %s38_s29 }
  0x17   :  { %s230_s30 = scalar_lea.vmem %s39_s29, 256  ;;  %p235_p11 = scmp.lt.s32.totalorder %s39_s29, %s39_s29 }
  0x18   :  { %p231_p10 = scmp.ne.s32.totalorder %s39_s29, %s230_s30  ;;  %p236_p12 = scmp.lt.s32.totalorder %s230_s30, %s230_s30 }
  0x1a   :  { %p237_p13 = por %p236_p12, %p235_p11 }
  0x1c   :  { %p238_p0 = pnand %p237_p13, %p231_p10 }
  0x1e   :  { %241 = shalt.err (!%p238_p0)
}
  0x1f   :  { %s249_s1 = smov 64   ;;  %s250_s6 = smov 4  }
  0x20   :  { %44 = dma.hbm_to_vmem [thread:$0]  %s306_s2, 256, %s39_s29, [#allocation7], %s249_s1, %s249_s1, %s250_s6  }
  0x21   :  { %242 = dma.done.wait [#allocation5], 128  }
  0x22   :  { %243 = vsyncadd [#allocation5], 4294967168 }
  0x23   :  { %244 = dma.done.wait [#allocation7], 384  }
  0x24   :  { %245 = vsyncadd [#allocation7], 4294966912  ;;  %vm63_vm0 = vcmask 7168   ;;  %v251_v0 = vmov 0.0   ;;  %vm252_vm1 = vmmov 0   ;;  %v180_v1 = vld [vmem:[#allocation8 + $0x8] sm:$0xff]   ;;  %v149_v17 = vstv %s308_s4 }
  0x25   :  { %64 = vst.msk [vmem:[#allocation2] sm:$0xff] %vm63_vm0, %v251_v0  ;;  %165 = vmatprep.subr.bf16.mxu0 %v251_v0  ;;  %169 = vmatprep.mubr.msk.bf16.mxu0 %vm252_vm1, %v251_v0  ;;  %v181_v2 = vld [vmem:[#allocation8] sm:$0xff]   ;;  %v65_v3 = vld [vmem:[#allocation4] sm:$0xff]  ;;  %v66_v4 = vld [vmem:[#allocation6] sm:$0xff]  ;;  %vm85_vm2 = vcmask 261120  }
  0x26   :  { %166 = vmatpush3.bf16.msra.mxu0 %v180_v1  ;;  %v67_v5 = vmul.f32 %v66_v4, %v65_v3  ;;  %v161_v8 = vld [vmem:[%s307_s3] ss:$0 sm:$0xff] }
  0x27   :  { %167 = vmatprep.subr.bf16.mxu0 %v251_v0 }
  0x28   :  { %v68_v6 = vpack.c.bf16 %v67_v5, %v67_v5 }
  0x2a   :  { %168 = vmatpush3.bf16.msra.mxu0 %v181_v2 }
  0x2c   :  { %v130_v14 = vld [vmem:[#allocation2] sm:$0xff] }
  0x2d   :  { %170 = vmatmul.mubr.msk.bf16.vlgmr.msra.gmra.mxu0 %vm85_vm2, %v68_v6 }
  0xed   :  { %v123_v7 = vpop.f32.mrf.mxu0 }
  0xee   :  { %v129_v9 = vmax.f32 %v123_v7, 0.0 }
  0xef   :  { %v171_v10 = vpop.f32.mrf.mxu0 }
  0xf0   :  { %v138_v11 = vmul.f32 %v161_v8, %v129_v9 }
  0xf1   :  { %v126_v12 = vpop.f32.mrf.mxu0 }
  0xf2   :  { %139 = vadd.xlane.f32.xlu0 %v138_v11 }
  0xf3   :  { %v172_v13 = vpop.f32.mrf.mxu0 }
 0x17b   :  { %v140_v15 = vpop.xlane.xlu0 %139 }
 0x17c   :  { %v141_v16 = vadd.f32 %v140_v15, %v130_v14 }
 0x17e   :  { %143 = vst.msk [vmem:[#allocation2] sm:$0xff] %vm63_vm0, %v141_v16 }
 0x185   :  { %v147_v18 = vld [vmem:[#allocation2] sm:$0xff] }
 0x186   :  { %v150_v19 = vadd.f32 %v149_v17, %v147_v18 }
 0x188   :  { %151 = vst.msk [vmem:[%s309_s5] sm:$0xff] %vm63_vm0, %v150_v19 }
 0x189   :  { %156 = vsyncpa [#allocation5], 1 }
 0x18a   :  { %157 = vsyncpa [#allocation7], 1 }

</bundles_post_ra>
